<compile_context>
chip_gen: v5e
topology: v5e:2x2
jax: 0.10.0
libtpu: 0.0.40
codegen_flags: <defaults>
</compile_context>

<pallas_src>
import functools

import jax
import jax.numpy as jnp
import numpy as np
from jax.experimental import pallas as pl
from jax.experimental.pallas import tpu as pltpu


# ----------------------------------------------------------------------------
# Fused kernel: (folded) input gates + LSTM recurrence + mu/logvar head + z
# ----------------------------------------------------------------------------
def _gaussian_lstm_kernel(x_ref, w_ref, b_ref, eps_ref, out_ref,
                          *, dt, V, H, D, In, start):
    # ---- Static views into the packed operand slabs (free) ----
    w_in = w_ref[0:In, :]                      # (In, 4H) bf16, embed folded in
    w_hh = w_ref[In:In + H, :]                 # (H, 4H)  bf16
    w_hd = w_ref[In + H:In + 2 * H, 0:2 * D]   # (H, 2D)  bf16, [mu | logvar]
    bg = b_ref[0:1, :]                         # (1, 4H)  f32 fused gate bias
    bh = b_ref[1:2, 0:2 * D]                   # (1, 2D)  f32 fused head bias

    # ---- Prologue (off the serial path): batched input-side gates ----
    x_bf = x_ref[...].astype(jnp.bfloat16)                              # (dt*V, In)
    gx = jnp.dot(x_bf, w_in, preferred_element_type=jnp.float32) + bg  # (dt*V, 4H)

    # ---- Serial LSTM recurrence (PyTorch gate order i, f, g, o) ----
    h = jnp.zeros((V, H), jnp.float32)
    c = jnp.zeros((V, H), jnp.float32)
    for t in range(dt):                        # fully unrolled, all static
        if t == 0:
            gates = gx[0:V, :]                 # h == 0 -> skip the recurrent dot
        else:
            gates = gx[t * V:(t + 1) * V, :] + jnp.dot(
                h.astype(jnp.bfloat16), w_hh,
                preferred_element_type=jnp.float32)                    # (V, 4H)
        sig = jax.nn.sigmoid(gates)            # one EUP pass over the whole row
        i_g = sig[:, 0 * H:1 * H]
        f_g = sig[:, 1 * H:2 * H]
        # g-gate columns were pre-scaled x2 in the wrapper:
        # 2*sigmoid(2a) - 1 == tanh(a)  (cheap VPU op instead of a second EUP pass)
        g_g = 2.0 * sig[:, 2 * H:3 * H] - 1.0
        o_g = sig[:, 3 * H:4 * H]
        c = f_g * c + i_g * g_g
        h = o_g * jnp.tanh(c)

        # ---- Per-step head + reparameterize (no dependence on later steps) ----
        if t >= start:
            r = (t - start) * V
            mulv = jnp.dot(h.astype(jnp.bfloat16), w_hd,
                           preferred_element_type=jnp.float32) + bh    # (V, 2D)
            mu = mulv[:, 0:D]
            lv = mulv[:, D:2 * D]
            z = eps_ref[r:r + V, :] * jnp.exp(0.5 * lv) + mu
            out_ref[r:r + V, 0:2 * D] = mulv                           # [mu|logvar]
            out_ref[r:r + V, 2 * D:3 * D] = z                          # [z]


# ----------------------------------------------------------------------------
# Wrapper
# ----------------------------------------------------------------------------
@functools.partial(jax.jit, static_argnames=("true_dt", "sample"))
def gaussian_lstm_forward(params, x, eps_orig, eps_last, *, true_dt, sample=True):
    dt, V, In = x.shape
    H = params["w_embed"].shape[0]
    D = params["w_mu"].shape[0]
    H4 = 4 * H

    # forward(): if dt == true_dt, h_in = h_in[1:]  -> heads only for steps [start:]
    start = 1 if dt == true_dt else 0
    T = dt - start
    # Guard the dt != true_dt path: eps_orig must cover exactly the head steps.
    assert eps_orig.shape == (T, V, D), "eps_orig must have one row per head step"

    # ---- Offline weight prep: fold embed, fuse heads, tanh-as-sigmoid rescale ----
    w_in = (params["w_ih"] @ params["w_embed"]).T                                # (In, 4H)
    bg = params["w_ih"] @ params["b_embed"] + params["b_ih"] + params["b_hh"]    # (4H,)
    w_hh = params["w_hh"].T                                                      # (H, 4H)
    gsl = slice(2 * H, 3 * H)                      # g-gate block
    w_in = w_in.at[:, gsl].multiply(2.0)
    w_hh = w_hh.at[:, gsl].multiply(2.0)
    bg = bg.at[gsl].multiply(2.0)

    w_hd = jnp.concatenate([params["w_mu"].T, params["w_logvar"].T], axis=1)     # (H, 2D)
    w_hd_pad = jnp.zeros((H, H4), jnp.float32).at[:, :2 * D].set(w_hd)
    b_hd = jnp.concatenate([params["b_mu"], params["b_logvar"]])                 # (2D,)

    # Packed operand slabs: bf16 weights (single MXU pass per dot), f32 biases.
    w_slab = jnp.concatenate([w_in, w_hh, w_hd_pad], axis=0).astype(jnp.bfloat16)  # (In+2H, 4H)
    b_slab = jnp.stack([bg, jnp.zeros((H4,), jnp.float32).at[:2 * D].set(b_hd)])   # (2, 4H)

    x_flat = x.reshape(dt * V, In)
    eps_flat = eps_orig.reshape(T * V, D)

    # Lane-dense padded output: [mu | logvar | z | pad] per row, rows padded to x8.
    out_rows = ((T * V + 7) // 8) * 8
    out_lanes = ((3 * D + 127) // 128) * 128

    flops = (2 * dt * V * In * H4           # fused input-side gates
             + 2 * dt * V * H * H4          # recurrent gates
             + 2 * T * V * H * 2 * D)       # fused mu/logvar head
    transcendentals = dt * V * (H4 + H) + T * V * D
    bytes_accessed = (4 * (x_flat.size + eps_flat.size + out_rows * out_lanes)
                      + 2 * w_slab.size + 4 * b_slab.size)

    kern = functools.partial(_gaussian_lstm_kernel,
                             dt=dt, V=V, H=H, D=D, In=In, start=start)
    vmem = pl.BlockSpec(memory_space=pltpu.MemorySpace.VMEM)

    out = pl.pallas_call(
        kern,
        out_shape=jax.ShapeDtypeStruct((out_rows, out_lanes), jnp.float32),
        in_specs=[vmem] * 4,
        out_specs=vmem,
        cost_estimate=pl.CostEstimate(flops=int(flops),
                                      transcendentals=int(transcendentals),
                                      bytes_accessed=int(bytes_accessed)),
    )(x_flat, w_slab, b_slab, eps_flat)

    out = out[:T * V, :3 * D].reshape(T, V, 3 * D)
    mu = out[..., 0 * D:1 * D]
    logvar = out[..., 1 * D:2 * D]
    z_orig = out[..., 2 * D:3 * D]

    # reparameterize(): append a pure-noise last step (training / sample=True),
    # or [mu, zeros] in eval mode (training=False, sample=False).
    if sample:
        z = jnp.concatenate([z_orig, eps_last], axis=0)
    else:
        z = jnp.concatenate([mu, jnp.zeros_like(eps_last)], axis=0)
    return z, mu, logvar


# ----------------------------------------------------------------------------
# Pure-JAX fp32 reference (for correctness check)
# ----------------------------------------------------------------------------
def reference_forward(params, x, eps_orig, eps_last, true_dt):
    dt, V, In = x.shape
    H = params["w_embed"].shape[0]
    emb = x.reshape(-1, In) @ params["w_embed"].T + params["b_embed"]
    emb = emb.reshape(dt, V, H)
    h = jnp.zeros((V, H), jnp.float32)
    c = jnp.zeros((V, H), jnp.float32)
    hs = []
    for t in range(dt):
        gates = (emb[t] @ params["w_ih"].T + params["b_ih"]
                 + h @ params["w_hh"].T + params["b_hh"])
        i_g = jax.nn.sigmoid(gates[:, 0 * H:1 * H])
        f_g = jax.nn.sigmoid(gates[:, 1 * H:2 * H])
        g_g = jnp.tanh(gates[:, 2 * H:3 * H])
        o_g = jax.nn.sigmoid(gates[:, 3 * H:4 * H])
        c = f_g * c + i_g * g_g
        h = o_g * jnp.tanh(c)
        hs.append(h)
    h_seq = jnp.stack(hs, axis=0)
    h_in = h_seq[1:] if dt == true_dt else h_seq
    mu = h_in @ params["w_mu"].T + params["b_mu"]
    lv = h_in @ params["w_logvar"].T + params["b_logvar"]
    z = jnp.concatenate([eps_orig * jnp.exp(0.5 * lv) + mu, eps_last], axis=0)
    return z, mu, lv


# ----------------------------------------------------------------------------
# Main
# ----------------------------------------------------------------------------
if __name__ == "__main__":
    dt, V = 8, 2
    input_size, hidden_size, output_size = 16, 32, 16
    true_dt = dt

    key = jax.random.PRNGKey(0)
    ks = jax.random.split(key, 16)

    params = {
        "w_embed":  jax.random.normal(ks[0], (hidden_size, input_size), jnp.float32) * 0.1,
        "b_embed":  jax.random.normal(ks[1], (hidden_size,), jnp.float32) * 0.1,
        "w_ih":     jax.random.normal(ks[2], (4 * hidden_size, hidden_size), jnp.float32) * 0.1,
        "w_hh":     jax.random.normal(ks[3], (4 * hidden_size, hidden_size), jnp.float32) * 0.1,
        "b_ih":     jax.random.normal(ks[4], (4 * hidden_size,), jnp.float32) * 0.1,
        "b_hh":     jax.random.normal(ks[5], (4 * hidden_size,), jnp.float32) * 0.1,
        "w_mu":     jax.random.normal(ks[6], (output_size, hidden_size), jnp.float32) * 0.1,
        "b_mu":     jax.random.normal(ks[7], (output_size,), jnp.float32) * 0.1,
        "w_logvar": jax.random.normal(ks[8], (output_size, hidden_size), jnp.float32) * 0.1,
        "b_logvar": jax.random.normal(ks[9], (output_size,), jnp.float32) * 0.1,
    }

    x = jax.random.normal(ks[10], (dt, V, input_size), jnp.float32)
    # Noise for reparameterize (torch.randn_like(std) + torch.randn(1,V,D)),
    # passed in explicitly since device-side RNG is not part of the kernel.
    eps_orig = jax.random.normal(ks[11], (dt - 1, V, output_size), jnp.float32)
    eps_last = jax.random.normal(ks[12], (1, V, output_size), jnp.float32)

    z, mu, logvar = gaussian_lstm_forward(
        params, x, eps_orig, eps_last, true_dt=true_dt, sample=True)
    jax.block_until_ready((z, mu, logvar))

    z_ref, mu_ref, lv_ref = reference_forward(params, x, eps_orig, eps_last, true_dt)

    # bf16 MXU operands (f32 accumulate) -> bf16-level tolerances vs. fp32 ref.
    RTOL, ATOL = 3e-2, 1e-2
    np.testing.assert_allclose(np.asarray(mu), np.asarray(mu_ref), rtol=RTOL, atol=ATOL)
    np.testing.assert_allclose(np.asarray(logvar), np.asarray(lv_ref), rtol=RTOL, atol=ATOL)
    np.testing.assert_allclose(np.asarray(z), np.asarray(z_ref), rtol=RTOL, atol=ATOL)

    # Validate the eval-mode (sample=False) branch: z == [mu, zeros].
    z_eval, mu_e, lv_e = gaussian_lstm_forward(
        params, x, eps_orig, eps_last, true_dt=true_dt, sample=False)
    jax.block_until_ready((z_eval, mu_e, lv_e))
    z_eval_ref = np.concatenate(
        [np.asarray(mu_ref), np.zeros((1, V, output_size), np.float32)], axis=0)
    np.testing.assert_allclose(np.asarray(z_eval), z_eval_ref, rtol=RTOL, atol=ATOL)

    assert z.shape == (dt, V, output_size)
    assert mu.shape == (dt - 1, V, output_size)
    assert logvar.shape == (dt - 1, V, output_size)

    print("KERNEL_OK")
</pallas_src>

<mosaic_0001>
module attributes {stable_mosaic.version = 11 : i64} {
  func.func @_gaussian_lstm_kernel(%arg0: memref<16x16xf32, #tpu.memory_space<vmem>>, %arg1: memref<80x128xbf16, #tpu.memory_space<vmem>>, %arg2: memref<2x128xf32, #tpu.memory_space<vmem>>, %arg3: memref<14x16xf32, #tpu.memory_space<vmem>>, %arg4: memref<16x128xf32, #tpu.memory_space<vmem>>) attributes {dimension_semantics = [], scalar_prefetch = 0 : i64, scratch_operands = 0 : i64, tpu.core_type = #tpu.core_type<tc>} {
    %c0 = arith.constant 0 : index
    %c0_0 = arith.constant 0 : index
    %0 = vector.load %arg1[%c0, %c0_0] : memref<80x128xbf16, #tpu.memory_space<vmem>>, vector<16x128xbf16>
    %c16 = arith.constant 16 : index
    %c0_1 = arith.constant 0 : index
    %1 = vector.load %arg1[%c16, %c0_1] : memref<80x128xbf16, #tpu.memory_space<vmem>>, vector<32x128xbf16>
    %c48 = arith.constant 48 : index
    %c0_2 = arith.constant 0 : index
    %2 = vector.load %arg1[%c48, %c0_2] : memref<80x128xbf16, #tpu.memory_space<vmem>>, vector<32x32xbf16>
    %c0_3 = arith.constant 0 : index
    %c0_4 = arith.constant 0 : index
    %3 = vector.load %arg2[%c0_3, %c0_4] : memref<2x128xf32, #tpu.memory_space<vmem>>, vector<1x128xf32>
    %c1 = arith.constant 1 : index
    %c0_5 = arith.constant 0 : index
    %4 = vector.load %arg2[%c1, %c0_5] : memref<2x128xf32, #tpu.memory_space<vmem>>, vector<1x32xf32>
    %c0_6 = arith.constant 0 : index
    %c0_7 = arith.constant 0 : index
    %5 = vector.load %arg0[%c0_6, %c0_7] : memref<16x16xf32, #tpu.memory_space<vmem>>, vector<16x16xf32>
    %6 = arith.truncf %5 : vector<16x16xf32> to vector<16x16xbf16>
    %cst = arith.constant dense<0.000000e+00> : vector<16x128xf32>
    %7 = tpu.matmul %6, %0, %cst {dimension_numbers = #tpu.dot_dimension_numbers<[1], [0], [0], [1], [0, 0, 1, 1], [], []>} : vector<16x16xbf16>, vector<16x128xbf16>, vector<16x128xf32> -> vector<16x128xf32>
    %8 = vector.broadcast %3 : vector<1x128xf32> to vector<16x128xf32>
    %9 = arith.addf %7, %8 : vector<16x128xf32>
    %cst_8 = arith.constant 0.000000e+00 : f32
    %10 = vector.broadcast %cst_8 : f32 to vector<2x32xf32>
    %11 = vector.extract_strided_slice %9 {offsets = [0, 0], sizes = [2, 128], strides = [1, 1]} : vector<16x128xf32> to vector<2x128xf32>
    %12 = arith.negf %11 : vector<2x128xf32>
    %13 = math.exp %12 : vector<2x128xf32>
    %cst_9 = arith.constant 1.000000e+00 : f32
    %14 = vector.broadcast %cst_9 : f32 to vector<2x128xf32>
    %15 = arith.addf %14, %13 : vector<2x128xf32>
    %16 = arith.divf %14, %15 : vector<2x128xf32>
    %17 = vector.extract_strided_slice %16 {offsets = [0, 0], sizes = [2, 32], strides = [1, 1]} : vector<2x128xf32> to vector<2x32xf32>
    %18 = vector.extract_strided_slice %16 {offsets = [0, 32], sizes = [2, 32], strides = [1, 1]} : vector<2x128xf32> to vector<2x32xf32>
    %19 = vector.extract_strided_slice %16 {offsets = [0, 64], sizes = [2, 32], strides = [1, 1]} : vector<2x128xf32> to vector<2x32xf32>
    %cst_10 = arith.constant 2.000000e+00 : f32
    %20 = vector.broadcast %cst_10 : f32 to vector<2x32xf32>
    %21 = arith.mulf %20, %19 : vector<2x32xf32>
    %cst_11 = arith.constant 1.000000e+00 : f32
    %22 = vector.broadcast %cst_11 : f32 to vector<2x32xf32>
    %23 = arith.subf %21, %22 : vector<2x32xf32>
    %24 = vector.extract_strided_slice %16 {offsets = [0, 96], sizes = [2, 32], strides = [1, 1]} : vector<2x128xf32> to vector<2x32xf32>
    %25 = arith.mulf %18, %10 : vector<2x32xf32>
    %26 = arith.mulf %17, %23 : vector<2x32xf32>
    %27 = arith.addf %25, %26 : vector<2x32xf32>
    %28 = math.tanh %27 : vector<2x32xf32>
    %29 = arith.mulf %24, %28 : vector<2x32xf32>
    %30 = vector.extract_strided_slice %9 {offsets = [2, 0], sizes = [2, 128], strides = [1, 1]} : vector<16x128xf32> to vector<2x128xf32>
    %31 = arith.truncf %29 : vector<2x32xf32> to vector<2x32xbf16>
    %cst_12 = arith.constant dense<0.000000e+00> : vector<2x128xf32>
    %32 = tpu.matmul %31, %1, %cst_12 {dimension_numbers = #tpu.dot_dimension_numbers<[1], [0], [0], [1], [0, 0, 1, 1], [], []>} : vector<2x32xbf16>, vector<32x128xbf16>, vector<2x128xf32> -> vector<2x128xf32>
    %33 = arith.addf %30, %32 : vector<2x128xf32>
    %34 = arith.negf %33 : vector<2x128xf32>
    %35 = math.exp %34 : vector<2x128xf32>
    %cst_13 = arith.constant 1.000000e+00 : f32
    %36 = vector.broadcast %cst_13 : f32 to vector<2x128xf32>
    %37 = arith.addf %36, %35 : vector<2x128xf32>
    %38 = arith.divf %36, %37 : vector<2x128xf32>
    %39 = vector.extract_strided_slice %38 {offsets = [0, 0], sizes = [2, 32], strides = [1, 1]} : vector<2x128xf32> to vector<2x32xf32>
    %40 = vector.extract_strided_slice %38 {offsets = [0, 32], sizes = [2, 32], strides = [1, 1]} : vector<2x128xf32> to vector<2x32xf32>
    %41 = vector.extract_strided_slice %38 {offsets = [0, 64], sizes = [2, 32], strides = [1, 1]} : vector<2x128xf32> to vector<2x32xf32>
    %cst_14 = arith.constant 2.000000e+00 : f32
    %42 = vector.broadcast %cst_14 : f32 to vector<2x32xf32>
    %43 = arith.mulf %42, %41 : vector<2x32xf32>
    %cst_15 = arith.constant 1.000000e+00 : f32
    %44 = vector.broadcast %cst_15 : f32 to vector<2x32xf32>
    %45 = arith.subf %43, %44 : vector<2x32xf32>
    %46 = vector.extract_strided_slice %38 {offsets = [0, 96], sizes = [2, 32], strides = [1, 1]} : vector<2x128xf32> to vector<2x32xf32>
    %47 = arith.mulf %40, %27 : vector<2x32xf32>
    %48 = arith.mulf %39, %45 : vector<2x32xf32>
    %49 = arith.addf %47, %48 : vector<2x32xf32>
    %50 = math.tanh %49 : vector<2x32xf32>
    %51 = arith.mulf %46, %50 : vector<2x32xf32>
    %52 = arith.truncf %51 : vector<2x32xf32> to vector<2x32xbf16>
    %cst_16 = arith.constant dense<0.000000e+00> : vector<2x32xf32>
    %53 = tpu.matmul %52, %2, %cst_16 {dimension_numbers = #tpu.dot_dimension_numbers<[1], [0], [0], [1], [0, 0, 1, 1], [], []>} : vector<2x32xbf16>, vector<32x32xbf16>, vector<2x32xf32> -> vector<2x32xf32>
    %54 = vector.broadcast %4 : vector<1x32xf32> to vector<2x32xf32>
    %55 = arith.addf %53, %54 : vector<2x32xf32>
    %56 = vector.extract_strided_slice %55 {offsets = [0, 0], sizes = [2, 16], strides = [1, 1]} : vector<2x32xf32> to vector<2x16xf32>
    %57 = vector.extract_strided_slice %55 {offsets = [0, 16], sizes = [2, 16], strides = [1, 1]} : vector<2x32xf32> to vector<2x16xf32>
    %c0_17 = arith.constant 0 : index
    %c0_18 = arith.constant 0 : index
    %58 = vector.load %arg3[%c0_17, %c0_18] : memref<14x16xf32, #tpu.memory_space<vmem>>, vector<2x16xf32>
    %cst_19 = arith.constant 5.000000e-01 : f32
    %59 = vector.broadcast %cst_19 : f32 to vector<2x16xf32>
    %60 = arith.mulf %59, %57 : vector<2x16xf32>
    %61 = math.exp %60 : vector<2x16xf32>
    %62 = arith.mulf %58, %61 : vector<2x16xf32>
    %63 = arith.addf %62, %56 : vector<2x16xf32>
    %c0_20 = arith.constant 0 : index
    %c0_21 = arith.constant 0 : index
    %64 = vector.load %arg4[%c0_20, %c0_21] : memref<16x128xf32, #tpu.memory_space<vmem>>, vector<2x32xf32>
    tpu.vector_store %arg4[%c0_20, %c0_21], %55 {strides = array<i32>} : memref<16x128xf32, #tpu.memory_space<vmem>>, vector<2x32xf32>,
    %c0_22 = arith.constant 0 : index
    %c32 = arith.constant 32 : index
    %65 = vector.load %arg4[%c0_22, %c32] : memref<16x128xf32, #tpu.memory_space<vmem>>, vector<2x16xf32>
    tpu.vector_store %arg4[%c0_22, %c32], %63 {strides = array<i32>} : memref<16x128xf32, #tpu.memory_space<vmem>>, vector<2x16xf32>,
    %66 = vector.extract_strided_slice %9 {offsets = [4, 0], sizes = [2, 128], strides = [1, 1]} : vector<16x128xf32> to vector<2x128xf32>
    %67 = arith.truncf %51 : vector<2x32xf32> to vector<2x32xbf16>
    %cst_23 = arith.constant dense<0.000000e+00> : vector<2x128xf32>
    %68 = tpu.matmul %67, %1, %cst_23 {dimension_numbers = #tpu.dot_dimension_numbers<[1], [0], [0], [1], [0, 0, 1, 1], [], []>} : vector<2x32xbf16>, vector<32x128xbf16>, vector<2x128xf32> -> vector<2x128xf32>
    %69 = arith.addf %66, %68 : vector<2x128xf32>
    %70 = arith.negf %69 : vector<2x128xf32>
    %71 = math.exp %70 : vector<2x128xf32>
    %cst_24 = arith.constant 1.000000e+00 : f32
    %72 = vector.broadcast %cst_24 : f32 to vector<2x128xf32>
    %73 = arith.addf %72, %71 : vector<2x128xf32>
    %74 = arith.divf %72, %73 : vector<2x128xf32>
    %75 = vector.extract_strided_slice %74 {offsets = [0, 0], sizes = [2, 32], strides = [1, 1]} : vector<2x128xf32> to vector<2x32xf32>
    %76 = vector.extract_strided_slice %74 {offsets = [0, 32], sizes = [2, 32], strides = [1, 1]} : vector<2x128xf32> to vector<2x32xf32>
    %77 = vector.extract_strided_slice %74 {offsets = [0, 64], sizes = [2, 32], strides = [1, 1]} : vector<2x128xf32> to vector<2x32xf32>
    %cst_25 = arith.constant 2.000000e+00 : f32
    %78 = vector.broadcast %cst_25 : f32 to vector<2x32xf32>
    %79 = arith.mulf %78, %77 : vector<2x32xf32>
    %cst_26 = arith.constant 1.000000e+00 : f32
    %80 = vector.broadcast %cst_26 : f32 to vector<2x32xf32>
    %81 = arith.subf %79, %80 : vector<2x32xf32>
    %82 = vector.extract_strided_slice %74 {offsets = [0, 96], sizes = [2, 32], strides = [1, 1]} : vector<2x128xf32> to vector<2x32xf32>
    %83 = arith.mulf %76, %49 : vector<2x32xf32>
    %84 = arith.mulf %75, %81 : vector<2x32xf32>
    %85 = arith.addf %83, %84 : vector<2x32xf32>
    %86 = math.tanh %85 : vector<2x32xf32>
    %87 = arith.mulf %82, %86 : vector<2x32xf32>
    %88 = arith.truncf %87 : vector<2x32xf32> to vector<2x32xbf16>
    %cst_27 = arith.constant dense<0.000000e+00> : vector<2x32xf32>
    %89 = tpu.matmul %88, %2, %cst_27 {dimension_numbers = #tpu.dot_dimension_numbers<[1], [0], [0], [1], [0, 0, 1, 1], [], []>} : vector<2x32xbf16>, vector<32x32xbf16>, vector<2x32xf32> -> vector<2x32xf32>
    %90 = vector.broadcast %4 : vector<1x32xf32> to vector<2x32xf32>
    %91 = arith.addf %89, %90 : vector<2x32xf32>
    %92 = vector.extract_strided_slice %91 {offsets = [0, 0], sizes = [2, 16], strides = [1, 1]} : vector<2x32xf32> to vector<2x16xf32>
    %93 = vector.extract_strided_slice %91 {offsets = [0, 16], sizes = [2, 16], strides = [1, 1]} : vector<2x32xf32> to vector<2x16xf32>
    %c2 = arith.constant 2 : index
    %c0_28 = arith.constant 0 : index
    %94 = vector.load %arg3[%c2, %c0_28] : memref<14x16xf32, #tpu.memory_space<vmem>>, vector<2x16xf32>
    %cst_29 = arith.constant 5.000000e-01 : f32
    %95 = vector.broadcast %cst_29 : f32 to vector<2x16xf32>
    %96 = arith.mulf %95, %93 : vector<2x16xf32>
    %97 = math.exp %96 : vector<2x16xf32>
    %98 = arith.mulf %94, %97 : vector<2x16xf32>
    %99 = arith.addf %98, %92 : vector<2x16xf32>
    %c2_30 = arith.constant 2 : index
    %c0_31 = arith.constant 0 : index
    %100 = vector.load %arg4[%c2_30, %c0_31] : memref<16x128xf32, #tpu.memory_space<vmem>>, vector<2x32xf32>
    tpu.vector_store %arg4[%c2_30, %c0_31], %91 {strides = array<i32>} : memref<16x128xf32, #tpu.memory_space<vmem>>, vector<2x32xf32>,
    %c2_32 = arith.constant 2 : index
    %c32_33 = arith.constant 32 : index
    %101 = vector.load %arg4[%c2_32, %c32_33] : memref<16x128xf32, #tpu.memory_space<vmem>>, vector<2x16xf32>
    tpu.vector_store %arg4[%c2_32, %c32_33], %99 {strides = array<i32>} : memref<16x128xf32, #tpu.memory_space<vmem>>, vector<2x16xf32>,
    %102 = vector.extract_strided_slice %9 {offsets = [6, 0], sizes = [2, 128], strides = [1, 1]} : vector<16x128xf32> to vector<2x128xf32>
    %103 = arith.truncf %87 : vector<2x32xf32> to vector<2x32xbf16>
    %cst_34 = arith.constant dense<0.000000e+00> : vector<2x128xf32>
    %104 = tpu.matmul %103, %1, %cst_34 {dimension_numbers = #tpu.dot_dimension_numbers<[1], [0], [0], [1], [0, 0, 1, 1], [], []>} : vector<2x32xbf16>, vector<32x128xbf16>, vector<2x128xf32> -> vector<2x128xf32>
    %105 = arith.addf %102, %104 : vector<2x128xf32>
    %106 = arith.negf %105 : vector<2x128xf32>
    %107 = math.exp %106 : vector<2x128xf32>
    %cst_35 = arith.constant 1.000000e+00 : f32
    %108 = vector.broadcast %cst_35 : f32 to vector<2x128xf32>
    %109 = arith.addf %108, %107 : vector<2x128xf32>
    %110 = arith.divf %108, %109 : vector<2x128xf32>
    %111 = vector.extract_strided_slice %110 {offsets = [0, 0], sizes = [2, 32], strides = [1, 1]} : vector<2x128xf32> to vector<2x32xf32>
    %112 = vector.extract_strided_slice %110 {offsets = [0, 32], sizes = [2, 32], strides = [1, 1]} : vector<2x128xf32> to vector<2x32xf32>
    %113 = vector.extract_strided_slice %110 {offsets = [0, 64], sizes = [2, 32], strides = [1, 1]} : vector<2x128xf32> to vector<2x32xf32>
    %cst_36 = arith.constant 2.000000e+00 : f32
    %114 = vector.broadcast %cst_36 : f32 to vector<2x32xf32>
    %115 = arith.mulf %114, %113 : vector<2x32xf32>
    %cst_37 = arith.constant 1.000000e+00 : f32
    %116 = vector.broadcast %cst_37 : f32 to vector<2x32xf32>
    %117 = arith.subf %115, %116 : vector<2x32xf32>
    %118 = vector.extract_strided_slice %110 {offsets = [0, 96], sizes = [2, 32], strides = [1, 1]} : vector<2x128xf32> to vector<2x32xf32>
    %119 = arith.mulf %112, %85 : vector<2x32xf32>
    %120 = arith.mulf %111, %117 : vector<2x32xf32>
    %121 = arith.addf %119, %120 : vector<2x32xf32>
    %122 = math.tanh %121 : vector<2x32xf32>
    %123 = arith.mulf %118, %122 : vector<2x32xf32>
    %124 = arith.truncf %123 : vector<2x32xf32> to vector<2x32xbf16>
    %cst_38 = arith.constant dense<0.000000e+00> : vector<2x32xf32>
    %125 = tpu.matmul %124, %2, %cst_38 {dimension_numbers = #tpu.dot_dimension_numbers<[1], [0], [0], [1], [0, 0, 1, 1], [], []>} : vector<2x32xbf16>, vector<32x32xbf16>, vector<2x32xf32> -> vector<2x32xf32>
    %126 = vector.broadcast %4 : vector<1x32xf32> to vector<2x32xf32>
    %127 = arith.addf %125, %126 : vector<2x32xf32>
    %128 = vector.extract_strided_slice %127 {offsets = [0, 0], sizes = [2, 16], strides = [1, 1]} : vector<2x32xf32> to vector<2x16xf32>
    %129 = vector.extract_strided_slice %127 {offsets = [0, 16], sizes = [2, 16], strides = [1, 1]} : vector<2x32xf32> to vector<2x16xf32>
    %c4 = arith.constant 4 : index
    %c0_39 = arith.constant 0 : index
    %130 = vector.load %arg3[%c4, %c0_39] : memref<14x16xf32, #tpu.memory_space<vmem>>, vector<2x16xf32>
    %cst_40 = arith.constant 5.000000e-01 : f32
    %131 = vector.broadcast %cst_40 : f32 to vector<2x16xf32>
    %132 = arith.mulf %131, %129 : vector<2x16xf32>
    %133 = math.exp %132 : vector<2x16xf32>
    %134 = arith.mulf %130, %133 : vector<2x16xf32>
    %135 = arith.addf %134, %128 : vector<2x16xf32>
    %c4_41 = arith.constant 4 : index
    %c0_42 = arith.constant 0 : index
    %136 = vector.load %arg4[%c4_41, %c0_42] : memref<16x128xf32, #tpu.memory_space<vmem>>, vector<2x32xf32>
    tpu.vector_store %arg4[%c4_41, %c0_42], %127 {strides = array<i32>} : memref<16x128xf32, #tpu.memory_space<vmem>>, vector<2x32xf32>,
    %c4_43 = arith.constant 4 : index
    %c32_44 = arith.constant 32 : index
    %137 = vector.load %arg4[%c4_43, %c32_44] : memref<16x128xf32, #tpu.memory_space<vmem>>, vector<2x16xf32>
    tpu.vector_store %arg4[%c4_43, %c32_44], %135 {strides = array<i32>} : memref<16x128xf32, #tpu.memory_space<vmem>>, vector<2x16xf32>,
    %138 = vector.extract_strided_slice %9 {offsets = [8, 0], sizes = [2, 128], strides = [1, 1]} : vector<16x128xf32> to vector<2x128xf32>
    %139 = arith.truncf %123 : vector<2x32xf32> to vector<2x32xbf16>
    %cst_45 = arith.constant dense<0.000000e+00> : vector<2x128xf32>
    %140 = tpu.matmul %139, %1, %cst_45 {dimension_numbers = #tpu.dot_dimension_numbers<[1], [0], [0], [1], [0, 0, 1, 1], [], []>} : vector<2x32xbf16>, vector<32x128xbf16>, vector<2x128xf32> -> vector<2x128xf32>
    %141 = arith.addf %138, %140 : vector<2x128xf32>
    %142 = arith.negf %141 : vector<2x128xf32>
    %143 = math.exp %142 : vector<2x128xf32>
    %cst_46 = arith.constant 1.000000e+00 : f32
    %144 = vector.broadcast %cst_46 : f32 to vector<2x128xf32>
    %145 = arith.addf %144, %143 : vector<2x128xf32>
    %146 = arith.divf %144, %145 : vector<2x128xf32>
    %147 = vector.extract_strided_slice %146 {offsets = [0, 0], sizes = [2, 32], strides = [1, 1]} : vector<2x128xf32> to vector<2x32xf32>
    %148 = vector.extract_strided_slice %146 {offsets = [0, 32], sizes = [2, 32], strides = [1, 1]} : vector<2x128xf32> to vector<2x32xf32>
    %149 = vector.extract_strided_slice %146 {offsets = [0, 64], sizes = [2, 32], strides = [1, 1]} : vector<2x128xf32> to vector<2x32xf32>
    %cst_47 = arith.constant 2.000000e+00 : f32
    %150 = vector.broadcast %cst_47 : f32 to vector<2x32xf32>
    %151 = arith.mulf %150, %149 : vector<2x32xf32>
    %cst_48 = arith.constant 1.000000e+00 : f32
    %152 = vector.broadcast %cst_48 : f32 to vector<2x32xf32>
    %153 = arith.subf %151, %152 : vector<2x32xf32>
    %154 = vector.extract_strided_slice %146 {offsets = [0, 96], sizes = [2, 32], strides = [1, 1]} : vector<2x128xf32> to vector<2x32xf32>
    %155 = arith.mulf %148, %121 : vector<2x32xf32>
    %156 = arith.mulf %147, %153 : vector<2x32xf32>
    %157 = arith.addf %155, %156 : vector<2x32xf32>
    %158 = math.tanh %157 : vector<2x32xf32>
    %159 = arith.mulf %154, %158 : vector<2x32xf32>
    %160 = arith.truncf %159 : vector<2x32xf32> to vector<2x32xbf16>
    %cst_49 = arith.constant dense<0.000000e+00> : vector<2x32xf32>
    %161 = tpu.matmul %160, %2, %cst_49 {dimension_numbers = #tpu.dot_dimension_numbers<[1], [0], [0], [1], [0, 0, 1, 1], [], []>} : vector<2x32xbf16>, vector<32x32xbf16>, vector<2x32xf32> -> vector<2x32xf32>
    %162 = vector.broadcast %4 : vector<1x32xf32> to vector<2x32xf32>
    %163 = arith.addf %161, %162 : vector<2x32xf32>
    %164 = vector.extract_strided_slice %163 {offsets = [0, 0], sizes = [2, 16], strides = [1, 1]} : vector<2x32xf32> to vector<2x16xf32>
    %165 = vector.extract_strided_slice %163 {offsets = [0, 16], sizes = [2, 16], strides = [1, 1]} : vector<2x32xf32> to vector<2x16xf32>
    %c6 = arith.constant 6 : index
    %c0_50 = arith.constant 0 : index
    %166 = vector.load %arg3[%c6, %c0_50] : memref<14x16xf32, #tpu.memory_space<vmem>>, vector<2x16xf32>
    %cst_51 = arith.constant 5.000000e-01 : f32
    %167 = vector.broadcast %cst_51 : f32 to vector<2x16xf32>
    %168 = arith.mulf %167, %165 : vector<2x16xf32>
    %169 = math.exp %168 : vector<2x16xf32>
    %170 = arith.mulf %166, %169 : vector<2x16xf32>
    %171 = arith.addf %170, %164 : vector<2x16xf32>
    %c6_52 = arith.constant 6 : index
    %c0_53 = arith.constant 0 : index
    %172 = vector.load %arg4[%c6_52, %c0_53] : memref<16x128xf32, #tpu.memory_space<vmem>>, vector<2x32xf32>
    tpu.vector_store %arg4[%c6_52, %c0_53], %163 {strides = array<i32>} : memref<16x128xf32, #tpu.memory_space<vmem>>, vector<2x32xf32>,
    %c6_54 = arith.constant 6 : index
    %c32_55 = arith.constant 32 : index
    %173 = vector.load %arg4[%c6_54, %c32_55] : memref<16x128xf32, #tpu.memory_space<vmem>>, vector<2x16xf32>
    tpu.vector_store %arg4[%c6_54, %c32_55], %171 {strides = array<i32>} : memref<16x128xf32, #tpu.memory_space<vmem>>, vector<2x16xf32>,
    %174 = vector.extract_strided_slice %9 {offsets = [10, 0], sizes = [2, 128], strides = [1, 1]} : vector<16x128xf32> to vector<2x128xf32>
    %175 = arith.truncf %159 : vector<2x32xf32> to vector<2x32xbf16>
    %cst_56 = arith.constant dense<0.000000e+00> : vector<2x128xf32>
    %176 = tpu.matmul %175, %1, %cst_56 {dimension_numbers = #tpu.dot_dimension_numbers<[1], [0], [0], [1], [0, 0, 1, 1], [], []>} : vector<2x32xbf16>, vector<32x128xbf16>, vector<2x128xf32> -> vector<2x128xf32>
    %177 = arith.addf %174, %176 : vector<2x128xf32>
    %178 = arith.negf %177 : vector<2x128xf32>
    %179 = math.exp %178 : vector<2x128xf32>
    %cst_57 = arith.constant 1.000000e+00 : f32
    %180 = vector.broadcast %cst_57 : f32 to vector<2x128xf32>
    %181 = arith.addf %180, %179 : vector<2x128xf32>
    %182 = arith.divf %180, %181 : vector<2x128xf32>
    %183 = vector.extract_strided_slice %182 {offsets = [0, 0], sizes = [2, 32], strides = [1, 1]} : vector<2x128xf32> to vector<2x32xf32>
    %184 = vector.extract_strided_slice %182 {offsets = [0, 32], sizes = [2, 32], strides = [1, 1]} : vector<2x128xf32> to vector<2x32xf32>
    %185 = vector.extract_strided_slice %182 {offsets = [0, 64], sizes = [2, 32], strides = [1, 1]} : vector<2x128xf32> to vector<2x32xf32>
    %cst_58 = arith.constant 2.000000e+00 : f32
    %186 = vector.broadcast %cst_58 : f32 to vector<2x32xf32>
    %187 = arith.mulf %186, %185 : vector<2x32xf32>
    %cst_59 = arith.constant 1.000000e+00 : f32
    %188 = vector.broadcast %cst_59 : f32 to vector<2x32xf32>
    %189 = arith.subf %187, %188 : vector<2x32xf32>
    %190 = vector.extract_strided_slice %182 {offsets = [0, 96], sizes = [2, 32], strides = [1, 1]} : vector<2x128xf32> to vector<2x32xf32>
    %191 = arith.mulf %184, %157 : vector<2x32xf32>
    %192 = arith.mulf %183, %189 : vector<2x32xf32>
    %193 = arith.addf %191, %192 : vector<2x32xf32>
    %194 = math.tanh %193 : vector<2x32xf32>
    %195 = arith.mulf %190, %194 : vector<2x32xf32>
    %196 = arith.truncf %195 : vector<2x32xf32> to vector<2x32xbf16>
    %cst_60 = arith.constant dense<0.000000e+00> : vector<2x32xf32>
    %197 = tpu.matmul %196, %2, %cst_60 {dimension_numbers = #tpu.dot_dimension_numbers<[1], [0], [0], [1], [0, 0, 1, 1], [], []>} : vector<2x32xbf16>, vector<32x32xbf16>, vector<2x32xf32> -> vector<2x32xf32>
    %198 = vector.broadcast %4 : vector<1x32xf32> to vector<2x32xf32>
    %199 = arith.addf %197, %198 : vector<2x32xf32>
    %200 = vector.extract_strided_slice %199 {offsets = [0, 0], sizes = [2, 16], strides = [1, 1]} : vector<2x32xf32> to vector<2x16xf32>
    %201 = vector.extract_strided_slice %199 {offsets = [0, 16], sizes = [2, 16], strides = [1, 1]} : vector<2x32xf32> to vector<2x16xf32>
    %c8 = arith.constant 8 : index
    %c0_61 = arith.constant 0 : index
    %202 = vector.load %arg3[%c8, %c0_61] : memref<14x16xf32, #tpu.memory_space<vmem>>, vector<2x16xf32>
    %cst_62 = arith.constant 5.000000e-01 : f32
    %203 = vector.broadcast %cst_62 : f32 to vector<2x16xf32>
    %204 = arith.mulf %203, %201 : vector<2x16xf32>
    %205 = math.exp %204 : vector<2x16xf32>
    %206 = arith.mulf %202, %205 : vector<2x16xf32>
    %207 = arith.addf %206, %200 : vector<2x16xf32>
    %c8_63 = arith.constant 8 : index
    %c0_64 = arith.constant 0 : index
    %208 = vector.load %arg4[%c8_63, %c0_64] : memref<16x128xf32, #tpu.memory_space<vmem>>, vector<2x32xf32>
    tpu.vector_store %arg4[%c8_63, %c0_64], %199 {strides = array<i32>} : memref<16x128xf32, #tpu.memory_space<vmem>>, vector<2x32xf32>,
    %c8_65 = arith.constant 8 : index
    %c32_66 = arith.constant 32 : index
    %209 = vector.load %arg4[%c8_65, %c32_66] : memref<16x128xf32, #tpu.memory_space<vmem>>, vector<2x16xf32>
    tpu.vector_store %arg4[%c8_65, %c32_66], %207 {strides = array<i32>} : memref<16x128xf32, #tpu.memory_space<vmem>>, vector<2x16xf32>,
    %210 = vector.extract_strided_slice %9 {offsets = [12, 0], sizes = [2, 128], strides = [1, 1]} : vector<16x128xf32> to vector<2x128xf32>
    %211 = arith.truncf %195 : vector<2x32xf32> to vector<2x32xbf16>
    %cst_67 = arith.constant dense<0.000000e+00> : vector<2x128xf32>
    %212 = tpu.matmul %211, %1, %cst_67 {dimension_numbers = #tpu.dot_dimension_numbers<[1], [0], [0], [1], [0, 0, 1, 1], [], []>} : vector<2x32xbf16>, vector<32x128xbf16>, vector<2x128xf32> -> vector<2x128xf32>
    %213 = arith.addf %210, %212 : vector<2x128xf32>
    %214 = arith.negf %213 : vector<2x128xf32>
    %215 = math.exp %214 : vector<2x128xf32>
    %cst_68 = arith.constant 1.000000e+00 : f32
    %216 = vector.broadcast %cst_68 : f32 to vector<2x128xf32>
    %217 = arith.addf %216, %215 : vector<2x128xf32>
    %218 = arith.divf %216, %217 : vector<2x128xf32>
    %219 = vector.extract_strided_slice %218 {offsets = [0, 0], sizes = [2, 32], strides = [1, 1]} : vector<2x128xf32> to vector<2x32xf32>
    %220 = vector.extract_strided_slice %218 {offsets = [0, 32], sizes = [2, 32], strides = [1, 1]} : vector<2x128xf32> to vector<2x32xf32>
    %221 = vector.extract_strided_slice %218 {offsets = [0, 64], sizes = [2, 32], strides = [1, 1]} : vector<2x128xf32> to vector<2x32xf32>
    %cst_69 = arith.constant 2.000000e+00 : f32
    %222 = vector.broadcast %cst_69 : f32 to vector<2x32xf32>
    %223 = arith.mulf %222, %221 : vector<2x32xf32>
    %cst_70 = arith.constant 1.000000e+00 : f32
    %224 = vector.broadcast %cst_70 : f32 to vector<2x32xf32>
    %225 = arith.subf %223, %224 : vector<2x32xf32>
    %226 = vector.extract_strided_slice %218 {offsets = [0, 96], sizes = [2, 32], strides = [1, 1]} : vector<2x128xf32> to vector<2x32xf32>
    %227 = arith.mulf %220, %193 : vector<2x32xf32>
    %228 = arith.mulf %219, %225 : vector<2x32xf32>
    %229 = arith.addf %227, %228 : vector<2x32xf32>
    %230 = math.tanh %229 : vector<2x32xf32>
    %231 = arith.mulf %226, %230 : vector<2x32xf32>
    %232 = arith.truncf %231 : vector<2x32xf32> to vector<2x32xbf16>
    %cst_71 = arith.constant dense<0.000000e+00> : vector<2x32xf32>
    %233 = tpu.matmul %232, %2, %cst_71 {dimension_numbers = #tpu.dot_dimension_numbers<[1], [0], [0], [1], [0, 0, 1, 1], [], []>} : vector<2x32xbf16>, vector<32x32xbf16>, vector<2x32xf32> -> vector<2x32xf32>
    %234 = vector.broadcast %4 : vector<1x32xf32> to vector<2x32xf32>
    %235 = arith.addf %233, %234 : vector<2x32xf32>
    %236 = vector.extract_strided_slice %235 {offsets = [0, 0], sizes = [2, 16], strides = [1, 1]} : vector<2x32xf32> to vector<2x16xf32>
    %237 = vector.extract_strided_slice %235 {offsets = [0, 16], sizes = [2, 16], strides = [1, 1]} : vector<2x32xf32> to vector<2x16xf32>
    %c10 = arith.constant 10 : index
    %c0_72 = arith.constant 0 : index
    %238 = vector.load %arg3[%c10, %c0_72] : memref<14x16xf32, #tpu.memory_space<vmem>>, vector<2x16xf32>
    %cst_73 = arith.constant 5.000000e-01 : f32
    %239 = vector.broadcast %cst_73 : f32 to vector<2x16xf32>
    %240 = arith.mulf %239, %237 : vector<2x16xf32>
    %241 = math.exp %240 : vector<2x16xf32>
    %242 = arith.mulf %238, %241 : vector<2x16xf32>
    %243 = arith.addf %242, %236 : vector<2x16xf32>
    %c10_74 = arith.constant 10 : index
    %c0_75 = arith.constant 0 : index
    %244 = vector.load %arg4[%c10_74, %c0_75] : memref<16x128xf32, #tpu.memory_space<vmem>>, vector<2x32xf32>
    tpu.vector_store %arg4[%c10_74, %c0_75], %235 {strides = array<i32>} : memref<16x128xf32, #tpu.memory_space<vmem>>, vector<2x32xf32>,
    %c10_76 = arith.constant 10 : index
    %c32_77 = arith.constant 32 : index
    %245 = vector.load %arg4[%c10_76, %c32_77] : memref<16x128xf32, #tpu.memory_space<vmem>>, vector<2x16xf32>
    tpu.vector_store %arg4[%c10_76, %c32_77], %243 {strides = array<i32>} : memref<16x128xf32, #tpu.memory_space<vmem>>, vector<2x16xf32>,
    %246 = vector.extract_strided_slice %9 {offsets = [14, 0], sizes = [2, 128], strides = [1, 1]} : vector<16x128xf32> to vector<2x128xf32>
    %247 = arith.truncf %231 : vector<2x32xf32> to vector<2x32xbf16>
    %cst_78 = arith.constant dense<0.000000e+00> : vector<2x128xf32>
    %248 = tpu.matmul %247, %1, %cst_78 {dimension_numbers = #tpu.dot_dimension_numbers<[1], [0], [0], [1], [0, 0, 1, 1], [], []>} : vector<2x32xbf16>, vector<32x128xbf16>, vector<2x128xf32> -> vector<2x128xf32>
    %249 = arith.addf %246, %248 : vector<2x128xf32>
    %250 = arith.negf %249 : vector<2x128xf32>
    %251 = math.exp %250 : vector<2x128xf32>
    %cst_79 = arith.constant 1.000000e+00 : f32
    %252 = vector.broadcast %cst_79 : f32 to vector<2x128xf32>
    %253 = arith.addf %252, %251 : vector<2x128xf32>
    %254 = arith.divf %252, %253 : vector<2x128xf32>
    %255 = vector.extract_strided_slice %254 {offsets = [0, 0], sizes = [2, 32], strides = [1, 1]} : vector<2x128xf32> to vector<2x32xf32>
    %256 = vector.extract_strided_slice %254 {offsets = [0, 32], sizes = [2, 32], strides = [1, 1]} : vector<2x128xf32> to vector<2x32xf32>
    %257 = vector.extract_strided_slice %254 {offsets = [0, 64], sizes = [2, 32], strides = [1, 1]} : vector<2x128xf32> to vector<2x32xf32>
    %cst_80 = arith.constant 2.000000e+00 : f32
    %258 = vector.broadcast %cst_80 : f32 to vector<2x32xf32>
    %259 = arith.mulf %258, %257 : vector<2x32xf32>
    %cst_81 = arith.constant 1.000000e+00 : f32
    %260 = vector.broadcast %cst_81 : f32 to vector<2x32xf32>
    %261 = arith.subf %259, %260 : vector<2x32xf32>
    %262 = vector.extract_strided_slice %254 {offsets = [0, 96], sizes = [2, 32], strides = [1, 1]} : vector<2x128xf32> to vector<2x32xf32>
    %263 = arith.mulf %256, %229 : vector<2x32xf32>
    %264 = arith.mulf %255, %261 : vector<2x32xf32>
    %265 = arith.addf %263, %264 : vector<2x32xf32>
    %266 = math.tanh %265 : vector<2x32xf32>
    %267 = arith.mulf %262, %266 : vector<2x32xf32>
    %268 = arith.truncf %267 : vector<2x32xf32> to vector<2x32xbf16>
    %cst_82 = arith.constant dense<0.000000e+00> : vector<2x32xf32>
    %269 = tpu.matmul %268, %2, %cst_82 {dimension_numbers = #tpu.dot_dimension_numbers<[1], [0], [0], [1], [0, 0, 1, 1], [], []>} : vector<2x32xbf16>, vector<32x32xbf16>, vector<2x32xf32> -> vector<2x32xf32>
    %270 = vector.broadcast %4 : vector<1x32xf32> to vector<2x32xf32>
    %271 = arith.addf %269, %270 : vector<2x32xf32>
    %272 = vector.extract_strided_slice %271 {offsets = [0, 0], sizes = [2, 16], strides = [1, 1]} : vector<2x32xf32> to vector<2x16xf32>
    %273 = vector.extract_strided_slice %271 {offsets = [0, 16], sizes = [2, 16], strides = [1, 1]} : vector<2x32xf32> to vector<2x16xf32>
    %c12 = arith.constant 12 : index
    %c0_83 = arith.constant 0 : index
    %274 = vector.load %arg3[%c12, %c0_83] : memref<14x16xf32, #tpu.memory_space<vmem>>, vector<2x16xf32>
    %cst_84 = arith.constant 5.000000e-01 : f32
    %275 = vector.broadcast %cst_84 : f32 to vector<2x16xf32>
    %276 = arith.mulf %275, %273 : vector<2x16xf32>
    %277 = math.exp %276 : vector<2x16xf32>
    %278 = arith.mulf %274, %277 : vector<2x16xf32>
    %279 = arith.addf %278, %272 : vector<2x16xf32>
    %c12_85 = arith.constant 12 : index
    %c0_86 = arith.constant 0 : index
    %280 = vector.load %arg4[%c12_85, %c0_86] : memref<16x128xf32, #tpu.memory_space<vmem>>, vector<2x32xf32>
    tpu.vector_store %arg4[%c12_85, %c0_86], %271 {strides = array<i32>} : memref<16x128xf32, #tpu.memory_space<vmem>>, vector<2x32xf32>,
    %c12_87 = arith.constant 12 : index
    %c32_88 = arith.constant 32 : index
    %281 = vector.load %arg4[%c12_87, %c32_88] : memref<16x128xf32, #tpu.memory_space<vmem>>, vector<2x16xf32>
    tpu.vector_store %arg4[%c12_87, %c32_88], %279 {strides = array<i32>} : memref<16x128xf32, #tpu.memory_space<vmem>>, vector<2x16xf32>,
    return
  }
}

</mosaic_0001>

<bundles_post_ra>
// kernel: gaussian_lstm_forward.1
= control target key start
LH: loop header
LB: loop body
LE: loop exit
PB: predicated region body
PF: predicated region fallthrough
CT: control target
= control target key end

     0   :  { %vm40_vm0 = vcmask 130048   ;;  %s920_s23 = smov 32   ;;  %vm112_vm5 = vcmask 261120   ;;  %vm218_vm10 = vcmask 254976   ;;  %s921_s18 = smov 112   ;;  %s1206_s1 = inlined_call_operand.vmem [shape: bf16[80,128], index: 1, kind: input, shape index: {}]   ;;  %s1207_s0 = inlined_call_operand.vmem [shape: f32[16,16], index: 0, kind: input, shape index: {}]   ;;  %s1208_s2 = inlined_call_operand.vmem [shape: f32[2,128], index: 2, kind: input, shape index: {}]   ;;  %s1209_s4 = inlined_call_operand.vmem [shape: f32[16,128], index: 4, kind: output, shape index: {}]   ;;  %s1210_s3 = inlined_call_operand.vmem [shape: f32[14,16], index: 3, kind: input, shape index: {}]  }
   0x1   :  { %v847_v0 = vld [vmem:[%s1206_s1] sm:$0xff]  ;;  %v31_v2 = vld [vmem:[%s1207_s0 + $0x8] sm:$0xff]  ;;  %v971_v28 = vld [vmem:[%s1206_s1 + $0x10] sm:$0xff] }
   0x2   :  { %v30_v1 = vld [vmem:[%s1207_s0] sm:$0xff]  ;;  %51 = vmatpush.bf16.msra.mxu0 %v847_v0  ;;  %s919_s0 = smov 64   ;;  %122 = vmatpush.bf16.msra.mxu1 %v971_v28  ;;  %v977_v29 = vld [vmem:[%s1206_s1 + $0x8] sm:$0xff]  ;;  %v1006_v61 = vld [vmem:[%s1206_s1 + $0x18] sm:$0xff] }
   0x3   :  { %v32_v3 = vpack.c.bf16 %v31_v2, %v30_v1  ;;  %v959_v4 = vld [vmem:[%s1208_s2] ss:$0 sm:$0xff]  ;;  %232 = vmatpush.bf16.msra.mxu3 %v971_v28 }
   0x4   :  { %v1000_v60 = vld [vmem:[%s1206_s1 + $0x20] sm:$0xff] }
   0x5   :  { %800 = vmatmul.msk.bf16.vlgmr.msra.gmra.mxu0 %vm40_vm0, %v32_v3  ;;  %201 = vmatpush.bf16.msra.mxu2 %v1000_v60  ;;  %v1025_v3 = vld [vmem:[%s1208_s2 + $0x1] ss:$0 sm:$0xff] }
   0x6   :  { %123 = vmatpush.bf16.msra.mxu1 %v977_v29  ;;  %298 = vmatpush.bf16.msrb.mxu0 %v1000_v60 }
   0x7   :  { %233 = vmatpush.bf16.msra.mxu3 %v977_v29 }
   0x9   :  { %202 = vmatpush.bf16.msra.mxu2 %v1006_v61 }
   0xa   :  { %327 = vmatpush.bf16.msrb.mxu1 %v971_v28  ;;  %299 = vmatpush.bf16.msrb.mxu0 %v1006_v61 }
   0xb   :  { %422 = vmatpush.bf16.msrb.mxu3 %v971_v28 }
   0xd   :  { %393 = vmatpush.bf16.msrb.mxu2 %v1000_v60 }
   0xe   :  { %328 = vmatpush.bf16.msrb.mxu1 %v977_v29  ;;  %484 = vmatpush.bf16.msra.mxu0 %v1000_v60 }
   0xf   :  { %423 = vmatpush.bf16.msrb.mxu3 %v977_v29 }
  0x11   :  { %394 = vmatpush.bf16.msrb.mxu2 %v1006_v61 }
  0x12   :  { %485 = vmatpush.bf16.msra.mxu0 %v1006_v61 }
  0x82   :  { %v53_v5 = vpop.f32.mrf.mxu0 }
  0x83   :  { %v962_v6 = vadd.f32 %v959_v4, %v53_v5 }
  0x85   :  { %v801_v7 = vmul.f32 -1.442695, %v962_v6 }
  0x87   :  { %857 = vpow2.f32 %v801_v7 }
  0x8d   :  { %v858_v8 = vpop.eup %857 }
  0x8e   :  { %v61_v9 = vadd.f32 1.0, %v858_v8 }
  0x90   :  { %859 = vrcp.f32 %v61_v9  ;;  %v73_v13 = vand.u32 2147483648, %v61_v9  ;;  %v71_v15 = vand.u32 2147483647, %v61_v9  ;;  %vm67_vm2 = vweird.f32 %v61_v9 }
  0x92   :  { %v74_v17 = vor.u32 1.1754944e-38, %v73_v13  ;;  %vm72_vm4 = vcmp.eq.f32.partialorder %v71_v15, 8.507059e+37 }
  0x96   :  { %v860_v10 = vpop.eup %859 }
  0x97   :  { %v63_v11 = vmul.f32 %v860_v10, %v61_v9  ;;  %vm68_vm1 = vweird.f32 %v860_v10 }
  0x98   :  { %vm69_vm3 = vmor %vm67_vm2, %vm68_vm1 }
  0x99   :  { %v64_v12 = vsub.f32 1.0, %v63_v11 }
  0x9b   :  { %v65_v14 = vmul.f32 %v860_v10, %v64_v12 }
  0x9d   :  { %v66_v16 = vadd.f32 %v860_v10, %v65_v14 }
  0x9f   :  { %v70_v18 = vsel %vm69_vm3, %v860_v10, %v66_v16 }
  0xa0   :  { %v75_v19 = vsel %vm72_vm4, %v74_v17, %v70_v18 }
  0xa1   :  { %v77_v20 = vmul.f32 2.0, %v75_v19  ;;  %v79_v24 = vmul.f32 0.0, %v75_v19 }
  0xa3   :  { %v802_v21 = vadd.f32 -1.0, %v77_v20 }
  0xa5   :  { %81 = vrot.lane.b32.xlu0 %v802_v21, %s919_s0 }
 0x117   :  { %v82_v22 = vpop.permute.xlu0 %81 }
 0x118   :  { %v84_v23 = vmul.f32 %v82_v22, %v75_v19 }
 0x11a   :  { %86 = vrot.lane.b32.xlu0 %v84_v23, %s920_s23 }
 0x18c   :  { %v87_v25 = vpop.permute.xlu0 %86 }
 0x18d   :  { %v89_v26 = vadd.f32 %v87_v25, %v79_v24 }
 0x18f   :  { %861 = vtanh.f32 %v89_v26  ;;  %v155_v55 = vrot.slane %v89_v26, 6 }
 0x195   :  { %v862_v27 = vpop.eup %861 }
 0x196   :  { %92 = vrot.lane.b32.xlu1 %v862_v27, %s919_s0 }
 0x208   :  { %v93_v30 = vpop.permute.xlu1 %92 }
 0x209   :  { %v95_v31 = vmul.f32 %v93_v30, %v75_v19 }
 0x20b   :  { %v96_v32 = vpack.c.bf16 %v95_v31, %v95_v31 }
 0x20d   :  { %98 = vrot.lane.b32.xlu1 %v96_v32, %s920_s23 }
 0x27f   :  { %v99_v33 = vpop.permute.xlu1 %98 }
 0x280   :  { %811 = vmatmul.msk.bf16.vlgmr.msra.gmra.mxu1 %vm112_vm5, %v99_v33 }
 0x281   :  { %513 = vmatpush.bf16.msra.mxu1 %v971_v28 }
 0x285   :  { %514 = vmatpush.bf16.msra.mxu1 %v977_v29 }
 0x2fd   :  { %v125_v34 = vpop.f32.mrf.mxu1 }
 0x2fe   :  { %v130_v35 = vrot.slane %v125_v34, 6 }
 0x300   :  { %v132_v36 = vadd.f32 %v130_v35, %v962_v6 }
 0x302   :  { %v812_v37 = vmul.f32 -1.442695, %v132_v36 }
 0x304   :  { %863 = vpow2.f32 %v812_v37 }
 0x305   :  { %v127_v38 = vpop.f32.mrf.mxu1 }
 0x30a   :  { %v864_v39 = vpop.eup %863 }
 0x30b   :  { %v136_v40 = vadd.f32 1.0, %v864_v39 }
 0x30d   :  { %865 = vrcp.f32 %v136_v40  ;;  %v148_v44 = vand.u32 2147483648, %v136_v40  ;;  %v146_v46 = vand.u32 2147483647, %v136_v40  ;;  %vm142_vm7 = vweird.f32 %v136_v40 }
 0x30f   :  { %v149_v48 = vor.u32 1.1754944e-38, %v148_v44  ;;  %vm147_vm9 = vcmp.eq.f32.partialorder %v146_v46, 8.507059e+37 }
 0x313   :  { %v866_v41 = vpop.eup %865 }
 0x314   :  { %v138_v42 = vmul.f32 %v866_v41, %v136_v40  ;;  %vm143_vm6 = vweird.f32 %v866_v41 }
 0x315   :  { %vm144_vm8 = vmor %vm142_vm7, %vm143_vm6 }
 0x316   :  { %v139_v43 = vsub.f32 1.0, %v138_v42  ;;  %v55_v42 = vpop.f32.mrf.mxu0 }
 0x318   :  { %v140_v45 = vmul.f32 %v866_v41, %v139_v43 }
 0x31a   :  { %v141_v47 = vadd.f32 %v866_v41, %v140_v45 }
 0x31c   :  { %v145_v49 = vsel %vm144_vm8, %v866_v41, %v141_v47 }
 0x31d   :  { %v150_v50 = vsel %vm147_vm9, %v149_v48, %v145_v49 }
 0x31e   :  { %v152_v51 = vmul.f32 2.0, %v150_v50  ;;  %v157_v56 = vmul.f32 %v155_v55, %v150_v50 }
 0x320   :  { %v813_v52 = vadd.f32 -1.0, %v152_v51 }
 0x322   :  { %159 = vrot.lane.b32.xlu2 %v813_v52, %s919_s0 }
 0x37c   :  { %v160_v53 = vpop.permute.xlu2 %159 }
 0x37d   :  { %v162_v54 = vmul.f32 %v160_v53, %v150_v50 }
 0x37f   :  { %164 = vrot.lane.b32.xlu2 %v162_v54, %s920_s23 }
 0x3d9   :  { %v165_v57 = vpop.permute.xlu2 %164 }
 0x3da   :  { %v993_v58 = vadd.f32 %v165_v57, %v157_v56 }
 0x3dc   :  { %867 = vtanh.f32 %v993_v58  ;;  %v265_v32 = vrot.slane %v993_v58, 6 }
 0x3e2   :  { %v868_v59 = vpop.eup %867 }
 0x3e3   :  { %170 = vrot.lane.b32.xlu0 %v868_v59, %s919_s0 }
 0x455   :  { %v171_v62 = vpop.permute.xlu0 %170 }
 0x456   :  { %v173_v63 = vmul.f32 %v171_v62, %v150_v50 }
 0x458   :  { %v174_v0 = vpack.c.bf16 %v173_v63, %v173_v63 }
 0x45a   :  { %v177_v1 = vrot.slane %v174_v0, 1 }
 0x45c   :  { %178 = vrot.lane.b32.xlu1 %v177_v1, %s920_s23 }
 0x4ce   :  { %v179_v2 = vpop.permute.xlu1 %178 }
 0x4cf   :  { %822 = vmatmul.msk.bf16.vlgmr.msra.gmra.mxu2 %vm112_vm5, %v179_v2  ;;  %823 = vmatmul.msk.bf16.vlgmr.msra.gmra.mxu3 %vm112_vm5, %v179_v2 }
 0x4d0   :  { %608 = vmatpush.bf16.msra.mxu3 %v971_v28  ;;  %579 = vmatpush.bf16.msra.mxu2 %v1000_v60 }
 0x4d4   :  { %609 = vmatpush.bf16.msra.mxu3 %v977_v29  ;;  %580 = vmatpush.bf16.msra.mxu2 %v1006_v61 }
 0x552   :  { %v204_v5 = vpop.f32.mrf.mxu2  ;;  %v235_v7 = vpop.f32.mrf.mxu3 }
 0x553   :  { %v1028_v8 = vadd.f32 %v1025_v3, %v204_v5  ;;  %v240_v9 = vrot.slane %v235_v7, 4 }
 0x555   :  { %219 = vst.msk [vmem:[%s1209_s4] sm:$0x3] %vm218_vm10, %v1028_v8  ;;  %v242_v10 = vadd.f32 %v240_v9, %v962_v6 }
 0x557   :  { %v824_v11 = vmul.f32 -1.442695, %v242_v10 }
 0x559   :  { %869 = vpow2.f32 %v824_v11 }
 0x55a   :  { %v206_v12 = vpop.f32.mrf.mxu2  ;;  %v237_v13 = vpop.f32.mrf.mxu3 }
 0x55f   :  { %v870_v14 = vpop.eup %869 }
 0x560   :  { %v246_v15 = vadd.f32 1.0, %v870_v14 }
 0x562   :  { %871 = vrcp.f32 %v246_v15  ;;  %v258_v19 = vand.u32 2147483648, %v246_v15  ;;  %v256_v21 = vand.u32 2147483647, %v246_v15  ;;  %vm252_vm12 = vweird.f32 %v246_v15 }
 0x564   :  { %v259_v23 = vor.u32 1.1754944e-38, %v258_v19  ;;  %vm257_vm14 = vcmp.eq.f32.partialorder %v256_v21, 8.507059e+37 }
 0x568   :  { %v872_v16 = vpop.eup %871 }
 0x569   :  { %v248_v17 = vmul.f32 %v872_v16, %v246_v15  ;;  %vm253_vm11 = vweird.f32 %v872_v16 }
 0x56a   :  { %vm254_vm13 = vmor %vm252_vm12, %vm253_vm11 }
 0x56b   :  { %v249_v18 = vsub.f32 1.0, %v248_v17 }
 0x56d   :  { %v250_v20 = vmul.f32 %v872_v16, %v249_v18 }
 0x56f   :  { %v251_v22 = vadd.f32 %v872_v16, %v250_v20 }
 0x571   :  { %v255_v24 = vsel %vm254_vm13, %v872_v16, %v251_v22  ;;  %v1065_v16 = vadd.f32 %v959_v4, %v55_v42 }
 0x572   :  { %v260_v25 = vsel %vm257_vm14, %v259_v23, %v255_v24 }
 0x573   :  { %v262_v26 = vmul.f32 2.0, %v260_v25  ;;  %v267_v33 = vmul.f32 %v265_v32, %v260_v25 }
 0x575   :  { %v825_v27 = vadd.f32 -1.0, %v262_v26 }
 0x577   :  { %269 = vrot.lane.b32.xlu2 %v825_v27, %s919_s0 }
 0x5d1   :  { %v270_v30 = vpop.permute.xlu2 %269 }
 0x5d2   :  { %v272_v31 = vmul.f32 %v270_v30, %v260_v25 }
 0x5d4   :  { %274 = vrot.lane.b32.xlu0 %v272_v31, %s920_s23 }
 0x646   :  { %v275_v34 = vpop.permute.xlu0 %274 }
 0x647   :  { %v277_v35 = vadd.f32 %v275_v34, %v267_v33 }
 0x649   :  { %873 = vtanh.f32 %v277_v35  ;;  %v360_v2 = vrot.slane %v277_v35, 6 }
 0x64f   :  { %v874_v36 = vpop.eup %873 }
 0x650   :  { %280 = vrot.lane.b32.xlu1 %v874_v36, %s919_s0 }
 0x6c2   :  { %v281_v37 = vpop.permute.xlu1 %280 }
 0x6c3   :  { %v283_v38 = vmul.f32 %v281_v37, %v260_v25 }
 0x6c5   :  { %v284_v39 = vpack.c.bf16 %v283_v38, %v283_v38 }
 0x6c7   :  { %v286_v40 = vrot.slane %v284_v39, 2 }
 0x6c9   :  { %287 = vrot.lane.b32.xlu2 %v286_v40, %s920_s23 }
 0x723   :  { %v288_v41 = vpop.permute.xlu2 %287 }
 0x724   :  { %826 = vmatmul.msk.bf16.vlgmr.msrb.gmra.mxu0 %vm112_vm5, %v288_v41  ;;  %827 = vmatmul.msk.bf16.vlgmr.msrb.gmra.mxu1 %vm112_vm5, %v288_v41 }
 0x725   :  { %703 = vmatpush.bf16.msrb.mxu1 %v971_v28  ;;  %674 = vmatpush.bf16.msrb.mxu0 %v1000_v60 }
 0x729   :  { %704 = vmatpush.bf16.msrb.mxu1 %v977_v29  ;;  %675 = vmatpush.bf16.msrb.mxu0 %v1006_v61 }
 0x7a1   :  { %v301_v43 = vpop.f32.mrf.mxu0  ;;  %v330_v44 = vpop.f32.mrf.mxu1 }
 0x7a2   :  { %v1048_v45 = vadd.f32 %v1025_v3, %v301_v43  ;;  %v335_v46 = vrot.slane %v330_v44, 2 }
 0x7a4   :  { %315 = vst.msk [vmem:[%s1209_s4 + $0x2] sm:$0x3] %vm218_vm10, %v1048_v45  ;;  %v337_v28 = vadd.f32 %v335_v46, %v962_v6 }
 0x7a6   :  { %v828_v47 = vmul.f32 -1.442695, %v337_v28 }
 0x7a8   :  { %875 = vpow2.f32 %v828_v47 }
 0x7a9   :  { %v303_v29 = vpop.f32.mrf.mxu0  ;;  %v332_v48 = vpop.f32.mrf.mxu1 }
 0x7ae   :  { %v876_v49 = vpop.eup %875 }
 0x7af   :  { %v341_v50 = vadd.f32 1.0, %v876_v49 }
 0x7b1   :  { %877 = vrcp.f32 %v341_v50  ;;  %v353_v54 = vand.u32 2147483648, %v341_v50  ;;  %v351_v56 = vand.u32 2147483647, %v341_v50  ;;  %vm347_vm0 = vweird.f32 %v341_v50 }
 0x7b3   :  { %v354_v58 = vor.u32 1.1754944e-38, %v353_v54  ;;  %vm352_vm2 = vcmp.eq.f32.partialorder %v351_v56, 8.507059e+37 }
 0x7b7   :  { %v878_v51 = vpop.eup %877 }
 0x7b8   :  { %v343_v52 = vmul.f32 %v878_v51, %v341_v50  ;;  %vm348_vm15 = vweird.f32 %v878_v51 }
 0x7b9   :  { %vm349_vm1 = vmor %vm347_vm0, %vm348_vm15 }
 0x7ba   :  { %v344_v53 = vsub.f32 1.0, %v343_v52 }
 0x7bc   :  { %v345_v55 = vmul.f32 %v878_v51, %v344_v53 }
 0x7be   :  { %v346_v57 = vadd.f32 %v878_v51, %v345_v55 }
 0x7c0   :  { %v350_v59 = vsel %vm349_vm1, %v878_v51, %v346_v57 }
 0x7c1   :  { %v355_v6 = vsel %vm352_vm2, %v354_v58, %v350_v59 }
 0x7c2   :  { %v357_v62 = vmul.f32 2.0, %v355_v6  ;;  %v362_v5 = vmul.f32 %v360_v2, %v355_v6 }
 0x7c4   :  { %v829_v63 = vadd.f32 -1.0, %v357_v62 }
 0x7c6   :  { %364 = vrot.lane.b32.xlu0 %v829_v63, %s919_s0 }
 0x838   :  { %v365_v0 = vpop.permute.xlu0 %364 }
 0x839   :  { %v367_v1 = vmul.f32 %v365_v0, %v355_v6 }
 0x83b   :  { %369 = vrot.lane.b32.xlu1 %v367_v1, %s920_s23 }
 0x8ad   :  { %v370_v7 = vpop.permute.xlu1 %369 }
 0x8ae   :  { %v372_v9 = vadd.f32 %v370_v7, %v362_v5 }
 0x8b0   :  { %879 = vtanh.f32 %v372_v9  ;;  %v452_v39 = vrot.slane %v372_v9, 6 }
 0x8b6   :  { %v880_v10 = vpop.eup %879 }
 0x8b7   :  { %375 = vrot.lane.b32.xlu2 %v880_v10, %s919_s0 }
 0x911   :  { %v376_v11 = vpop.permute.xlu2 %375 }
 0x912   :  { %v378_v12 = vmul.f32 %v376_v11, %v355_v6 }
 0x914   :  { %v379_v13 = vpack.c.bf16 %v378_v12, %v378_v12 }
 0x916   :  { %v381_v14 = vrot.slane %v379_v13, 3 }
 0x918   :  { %382 = vrot.lane.b32.xlu0 %v381_v14, %s920_s23 }
 0x98a   :  { %v383_v15 = vpop.permute.xlu0 %382 }
 0x98b   :  { %830 = vmatmul.msk.bf16.vlgmr.msrb.gmra.mxu2 %vm112_vm5, %v383_v15  ;;  %831 = vmatmul.msk.bf16.vlgmr.msrb.gmra.mxu3 %vm112_vm5, %v383_v15 }
 0x98c   :  { %769 = vmatpush.bf16.msrb.mxu2 %v1000_v60 }
 0x990   :  { %770 = vmatpush.bf16.msrb.mxu2 %v1006_v61 }
 0xa0e   :  { %v396_v17 = vpop.f32.mrf.mxu2  ;;  %v425_v18 = vpop.f32.mrf.mxu3 }
 0xa0f   :  { %v1068_v19 = vadd.f32 %v1025_v3, %v396_v17  ;;  %v429_v20 = vadd.f32 %v425_v18, %v1065_v16 }
 0xa11   :  { %410 = vst.msk [vmem:[%s1209_s4 + $0x4] sm:$0x3] %vm218_vm10, %v1068_v19  ;;  %v832_v21 = vmul.f32 -1.442695, %v429_v20 }
 0xa13   :  { %881 = vpow2.f32 %v832_v21 }
 0xa16   :  { %v398_v60 = vpop.f32.mrf.mxu2  ;;  %v427_v61 = vpop.f32.mrf.mxu3 }
 0xa19   :  { %v882_v22 = vpop.eup %881 }
 0xa1a   :  { %v433_v4 = vadd.f32 1.0, %v882_v22 }
 0xa1c   :  { %883 = vrcp.f32 %v433_v4  ;;  %v445_v26 = vand.u32 2147483648, %v433_v4  ;;  %v443_v30 = vand.u32 2147483647, %v433_v4  ;;  %vm439_vm4 = vweird.f32 %v433_v4 }
 0xa1e   :  { %v446_v32 = vor.u32 1.1754944e-38, %v445_v26  ;;  %vm444_vm7 = vcmp.eq.f32.partialorder %v443_v30, 8.507059e+37 }
 0xa22   :  { %v884_v23 = vpop.eup %883 }
 0xa23   :  { %v435_v24 = vmul.f32 %v884_v23, %v433_v4  ;;  %vm440_vm3 = vweird.f32 %v884_v23 }
 0xa24   :  { %vm441_vm6 = vmor %vm439_vm4, %vm440_vm3 }
 0xa25   :  { %v436_v25 = vsub.f32 1.0, %v435_v24 }
 0xa27   :  { %v437_v27 = vmul.f32 %v884_v23, %v436_v25 }
 0xa29   :  { %v438_v31 = vadd.f32 %v884_v23, %v437_v27 }
 0xa2b   :  { %v442_v33 = vsel %vm441_vm6, %v884_v23, %v438_v31  ;;  %vm224_vm6 = vcmask 386304  }
 0xa2c   :  { %v447_v34 = vsel %vm444_vm7, %v446_v32, %v442_v33 }
 0xa2d   :  { %v449_v35 = vmul.f32 2.0, %v447_v34  ;;  %v454_v40 = vmul.f32 %v452_v39, %v447_v34 }
 0xa2f   :  { %v833_v36 = vadd.f32 -1.0, %v449_v35 }
 0xa31   :  { %456 = vrot.lane.b32.xlu1 %v833_v36, %s919_s0 }
 0xaa3   :  { %v457_v37 = vpop.permute.xlu1 %456 }
 0xaa4   :  { %v459_v38 = vmul.f32 %v457_v37, %v447_v34 }
 0xaa6   :  { %461 = vrot.lane.b32.xlu2 %v459_v38, %s920_s23 }
 0xb00   :  { %v462_v41 = vpop.permute.xlu2 %461 }
 0xb01   :  { %v464_v42 = vadd.f32 %v462_v41, %v454_v40 }
 0xb03   :  { %885 = vtanh.f32 %v464_v42  ;;  %v546_v12 = vrot.slane %v464_v42, 6 }
 0xb09   :  { %v886_v43 = vpop.eup %885 }
 0xb0a   :  { %467 = vrot.lane.b32.xlu0 %v886_v43, %s919_s0 }
 0xb7c   :  { %v468_v44 = vpop.permute.xlu0 %467 }
 0xb7d   :  { %v470_v46 = vmul.f32 %v468_v44, %v447_v34 }
 0xb7f   :  { %v471_v28 = vpack.c.bf16 %v470_v46, %v470_v46 }
 0xb81   :  { %473 = vrot.lane.b32.xlu1 %v471_v28, %s920_s23 }
 0xbf3   :  { %v474_v47 = vpop.permute.xlu1 %473 }
 0xbf4   :  { %834 = vmatmul.msk.bf16.vlgmr.msra.gmra.mxu0 %vm112_vm5, %v474_v47  ;;  %835 = vmatmul.msk.bf16.vlgmr.msra.gmra.mxu1 %vm112_vm5, %v474_v47 }
 0xc71   :  { %v487_v29 = vpop.f32.mrf.mxu0  ;;  %v516_v48 = vpop.f32.mrf.mxu1 }
 0xc72   :  { %v1083_v49 = vadd.f32 %v1025_v3, %v487_v29  ;;  %v521_v50 = vrot.slane %v516_v48, 6 }
 0xc74   :  { %501 = vst.msk [vmem:[%s1209_s4 + $0x6] sm:$0x3] %vm218_vm10, %v1083_v49  ;;  %v523_v51 = vadd.f32 %v521_v50, %v1065_v16 }
 0xc76   :  { %v836_v52 = vmul.f32 -1.442695, %v523_v51 }
 0xc78   :  { %887 = vpow2.f32 %v836_v52 }
 0xc79   :  { %v489_v53 = vpop.f32.mrf.mxu0  ;;  %v518_v54 = vpop.f32.mrf.mxu1 }
 0xc7e   :  { %v888_v55 = vpop.eup %887 }
 0xc7f   :  { %v527_v56 = vadd.f32 1.0, %v888_v55 }
 0xc81   :  { %889 = vrcp.f32 %v527_v56  ;;  %v539_v6 = vand.u32 2147483648, %v527_v56  ;;  %v537_v63 = vand.u32 2147483647, %v527_v56  ;;  %vm533_vm9 = vweird.f32 %v527_v56 }
 0xc83   :  { %v540_v1 = vor.u32 1.1754944e-38, %v539_v6  ;;  %vm538_vm12 = vcmp.eq.f32.partialorder %v537_v63, 8.507059e+37 }
 0xc87   :  { %v890_v57 = vpop.eup %889 }
 0xc88   :  { %v529_v58 = vmul.f32 %v890_v57, %v527_v56  ;;  %vm534_vm8 = vweird.f32 %v890_v57 }
 0xc89   :  { %vm535_vm11 = vmor %vm533_vm9, %vm534_vm8 }
 0xc8a   :  { %v530_v59 = vsub.f32 1.0, %v529_v58 }
 0xc8c   :  { %v531_v62 = vmul.f32 %v890_v57, %v530_v59 }
 0xc8e   :  { %v532_v0 = vadd.f32 %v890_v57, %v531_v62 }
 0xc90   :  { %v536_v2 = vsel %vm535_vm11, %v890_v57, %v532_v0 }
 0xc91   :  { %v541_v5 = vsel %vm538_vm12, %v540_v1, %v536_v2 }
 0xc92   :  { %v543_v7 = vmul.f32 2.0, %v541_v5  ;;  %v548_v13 = vmul.f32 %v546_v12, %v541_v5 }
 0xc94   :  { %v837_v9 = vadd.f32 -1.0, %v543_v7 }
 0xc96   :  { %550 = vrot.lane.b32.xlu2 %v837_v9, %s919_s0 }
 0xcf0   :  { %v551_v10 = vpop.permute.xlu2 %550 }
 0xcf1   :  { %v553_v11 = vmul.f32 %v551_v10, %v541_v5 }
 0xcf3   :  { %555 = vrot.lane.b32.xlu0 %v553_v11, %s920_s23 }
 0xd65   :  { %v556_v14 = vpop.permute.xlu0 %555 }
 0xd66   :  { %v558_v15 = vadd.f32 %v556_v14, %v548_v13 }
 0xd68   :  { %891 = vtanh.f32 %v558_v15  ;;  %v641_v47 = vrot.slane %v558_v15, 6 }
 0xd6e   :  { %v892_v17 = vpop.eup %891 }
 0xd6f   :  { %561 = vrot.lane.b32.xlu1 %v892_v17, %s919_s0 }
 0xde1   :  { %v562_v18 = vpop.permute.xlu1 %561 }
 0xde2   :  { %v564_v20 = vmul.f32 %v562_v18, %v541_v5 }
 0xde4   :  { %v565_v21 = vpack.c.bf16 %v564_v20, %v564_v20 }
 0xde6   :  { %v567_v60 = vrot.slane %v565_v21, 1  ;;  %v209_v21 = vmul.f32 0.5, %v1028_v8 }
 0xde8   :  { %568 = vrot.lane.b32.xlu2 %v567_v60, %s920_s23  ;;  %v210_v60 = vmul.f32 1.442695, %v209_v21 }
 0xe42   :  { %v569_v61 = vpop.permute.xlu2 %568 }
 0xe43   :  { %838 = vmatmul.msk.bf16.vlgmr.msra.gmra.mxu2 %vm112_vm5, %v569_v61  ;;  %839 = vmatmul.msk.bf16.vlgmr.msra.gmra.mxu3 %vm112_vm5, %v569_v61 }
 0xec6   :  { %v582_v22 = vpop.f32.mrf.mxu2  ;;  %v611_v4 = vpop.f32.mrf.mxu3 }
 0xec7   :  { %v1098_v23 = vadd.f32 %v1025_v3, %v582_v22  ;;  %v616_v24 = vrot.slane %v611_v4, 4  ;;  %v492_v4 = vmul.f32 0.5, %v1083_v49 }
 0xec9   :  { %596 = vst.msk [vmem:[%s1209_s4 + $0x8] sm:$0x3] %vm218_vm10, %v1098_v23  ;;  %v618_v25 = vadd.f32 %v616_v24, %v1065_v16  ;;  %v493_v24 = vmul.f32 1.442695, %v492_v4 }
 0xecb   :  { %v840_v26 = vmul.f32 -1.442695, %v618_v25 }
 0xecd   :  { %893 = vpow2.f32 %v840_v26 }
 0xece   :  { %v584_v27 = vpop.f32.mrf.mxu2  ;;  %v613_v30 = vpop.f32.mrf.mxu3 }
 0xed3   :  { %v894_v31 = vpop.eup %893 }
 0xed4   :  { %v622_v32 = vadd.f32 1.0, %v894_v31 }
 0xed6   :  { %895 = vrcp.f32 %v622_v32  ;;  %v634_v36 = vand.u32 2147483648, %v622_v32  ;;  %v632_v38 = vand.u32 2147483647, %v622_v32  ;;  %vm628_vm14 = vweird.f32 %v622_v32 }
 0xed8   :  { %v635_v40 = vor.u32 1.1754944e-38, %v634_v36  ;;  %vm633_vm0 = vcmp.eq.f32.partialorder %v632_v38, 8.507059e+37  ;;  %v587_v36 = vmul.f32 0.5, %v1098_v23 }
 0xedc   :  { %v896_v33 = vpop.eup %895 }
 0xedd   :  { %v624_v34 = vmul.f32 %v896_v33, %v622_v32  ;;  %vm629_vm13 = vweird.f32 %v896_v33 }
 0xede   :  { %vm630_vm15 = vmor %vm628_vm14, %vm629_vm13 }
 0xedf   :  { %v625_v35 = vsub.f32 1.0, %v624_v34 }
 0xee1   :  { %v626_v37 = vmul.f32 %v896_v33, %v625_v35 }
 0xee3   :  { %v627_v39 = vadd.f32 %v896_v33, %v626_v37  ;;  %v588_v37 = vmul.f32 1.442695, %v587_v36 }
 0xee5   :  { %v631_v41 = vsel %vm630_vm15, %v896_v33, %v627_v39  ;;  %v306_v33 = vmul.f32 0.5, %v1048_v45 }
 0xee6   :  { %v636_v42 = vsel %vm633_vm0, %v635_v40, %v631_v41  ;;  %v208_v41 = vld [vmem:[%s1210_s3] sm:$0x3] }
 0xee7   :  { %v638_v43 = vmul.f32 2.0, %v636_v42  ;;  %v643_v29 = vmul.f32 %v641_v47, %v636_v42  ;;  %v307_v34 = vmul.f32 1.442695, %v306_v33 }
 0xee9   :  { %v841_v44 = vadd.f32 -1.0, %v638_v43 }
 0xeeb   :  { %645 = vrot.lane.b32.xlu0 %v841_v44, %s919_s0  ;;  %v491_v44 = vld [vmem:[%s1210_s3 + $0x6] sm:$0x3] }
 0xf5d   :  { %v646_v46 = vpop.permute.xlu0 %645 }
 0xf5e   :  { %v648_v28 = vmul.f32 %v646_v46, %v636_v42 }
 0xf60   :  { %650 = vrot.lane.b32.xlu1 %v648_v28, %s920_s23 }
 0xfd2   :  { %v651_v48 = vpop.permute.xlu1 %650 }
 0xfd3   :  { %v653_v50 = vadd.f32 %v651_v48, %v643_v29  ;;  %v401_v29 = vmul.f32 0.5, %v1068_v19 }
 0xfd5   :  { %897 = vtanh.f32 %v653_v50  ;;  %v736_v27 = vrot.slane %v653_v50, 6 }
 0xfdb   :  { %v898_v51 = vpop.eup %897 }
 0xfdc   :  { %656 = vrot.lane.b32.xlu2 %v898_v51, %s919_s0 }
0x1036   :  { %v657_v52 = vpop.permute.xlu2 %656 }
0x1037   :  { %v659_v53 = vmul.f32 %v657_v52, %v636_v42  ;;  %v402_v52 = vmul.f32 1.442695, %v401_v29 }
0x1039   :  { %v660_v54 = vpack.c.bf16 %v659_v53, %v659_v53 }
0x103b   :  { %v662_v55 = vrot.slane %v660_v54, 2 }
0x103d   :  { %663 = vrot.lane.b32.xlu0 %v662_v55, %s920_s23 }
0x10af   :  { %v664_v56 = vpop.permute.xlu0 %663 }
0x10b0   :  { %842 = vmatmul.msk.bf16.vlgmr.msrb.gmra.mxu0 %vm112_vm5, %v664_v56  ;;  %843 = vmatmul.msk.bf16.vlgmr.msrb.gmra.mxu1 %vm112_vm5, %v664_v56 }
0x112d   :  { %v677_v57 = vpop.f32.mrf.mxu0  ;;  %v706_v58 = vpop.f32.mrf.mxu1 }
0x112e   :  { %v1113_v59 = vadd.f32 %v1025_v3, %v677_v57  ;;  %v711_v6 = vrot.slane %v706_v58, 2  ;;  %v305_v58 = vld [vmem:[%s1210_s3 + $0x2] sm:$0x3] }
0x1130   :  { %691 = vst.msk [vmem:[%s1209_s4 + $0xa] sm:$0x3] %vm218_vm10, %v1113_v59  ;;  %v713_v62 = vadd.f32 %v711_v6, %v1065_v16 }
0x1132   :  { %v844_v63 = vmul.f32 -1.442695, %v713_v62 }
0x1134   :  { %899 = vpow2.f32 %v844_v63 }
0x1135   :  { %v679_v0 = vpop.f32.mrf.mxu0  ;;  %v708_v1 = vpop.f32.mrf.mxu1 }
0x1136   :  { %v586_v0 = vld [vmem:[%s1210_s3 + $0x8] sm:$0x3] }
0x113a   :  { %v900_v2 = vpop.eup %899 }
0x113b   :  { %v717_v5 = vadd.f32 1.0, %v900_v2 }
0x113d   :  { %901 = vrcp.f32 %v717_v5  ;;  %v729_v11 = vand.u32 2147483648, %v717_v5  ;;  %v727_v13 = vand.u32 2147483647, %v717_v5  ;;  %vm723_vm2 = vweird.f32 %v717_v5 }
0x113e   :  { %903 = vpow2.f32 %v210_v60 }
0x113f   :  { %v730_v15 = vor.u32 1.1754944e-38, %v729_v11  ;;  %vm728_vm4 = vcmp.eq.f32.partialorder %v727_v13, 8.507059e+37  ;;  %905 = vpow2.f32 %v493_v24 }
0x1143   :  { %v902_v7 = vpop.eup %901 }
0x1144   :  { %v719_v9 = vmul.f32 %v902_v7, %v717_v5  ;;  %vm724_vm1 = vweird.f32 %v902_v7  ;;  %v904_v25 = vpop.eup %903 }
0x1145   :  { %vm725_vm3 = vmor %vm723_vm2, %vm724_vm1  ;;  %v906_v26 = vpop.eup %905 }
0x1146   :  { %v720_v10 = vsub.f32 1.0, %v719_v9 }
0x1148   :  { %v721_v12 = vmul.f32 %v902_v7, %v720_v10 }
0x114a   :  { %v722_v14 = vadd.f32 %v902_v7, %v721_v12 }
0x114c   :  { %v726_v17 = vsel %vm725_vm3, %v902_v7, %v722_v14 }
0x114d   :  { %v731_v16 = vsel %vm728_vm4, %v730_v15, %v726_v17 }
0x114e   :  { %v733_v18 = vmul.f32 2.0, %v731_v16  ;;  %v738_v30 = vmul.f32 %v736_v27, %v731_v16 }
0x1150   :  { %v845_v20 = vadd.f32 -1.0, %v733_v18 }
0x1152   :  { %740 = vrot.lane.b32.xlu1 %v845_v20, %s919_s0 }
0x11c4   :  { %v741_v61 = vpop.permute.xlu1 %740 }
0x11c5   :  { %v743_v22 = vmul.f32 %v741_v61, %v731_v16  ;;  %v776_v61 = vld [vmem:[%s1210_s3 + $0xc] sm:$0x3] }
0x11c7   :  { %745 = vrot.lane.b32.xlu2 %v743_v22, %s920_s23 }
0x11cf   :  { %213 = vrot.lane.b32.xlu2 %v904_v25, %s921_s18 }
0x11d7   :  { %496 = vrot.lane.b32.xlu2 %v906_v26, %s921_s18 }
0x1221   :  { %v746_v31 = vpop.permute.xlu2 %745 }
0x1222   :  { %v748_v32 = vadd.f32 %v746_v31, %v738_v30 }
0x1224   :  { %907 = vtanh.f32 %v748_v32 }
0x1225   :  { %909 = vpow2.f32 %v307_v34 }
0x1226   :  { %911 = vpow2.f32 %v588_v37 }
0x1227   :  { %913 = vpow2.f32 %v402_v52 }
0x1229   :  { %v214_v39 = vpop.permute.xlu2 %213 }
0x122a   :  { %v908_v35 = vpop.eup %907  ;;  %v216_v42 = vmul.f32 %v214_v39, %v208_v41 }
0x122b   :  { %751 = vrot.lane.b32.xlu0 %v908_v35, %s919_s0  ;;  %v910_v38 = vpop.eup %909 }
0x122c   :  { %v912_v40 = vpop.eup %911  ;;  %v217_v43 = vadd.f32 %v216_v42, %v1028_v8  ;;  %v682_v8 = vmul.f32 0.5, %v1113_v59 }
0x122d   :  { %v914_v56 = vpop.eup %913 }
0x122e   :  { %v683_v55 = vmul.f32 1.442695, %v682_v8 }
0x1230   :  { %915 = vpow2.f32 %v683_v55 }
0x1231   :  { %v497_v46 = vpop.permute.xlu2 %496 }
0x1232   :  { %v499_v28 = vmul.f32 %v497_v46, %v491_v44 }
0x1233   :  { %310 = vrot.lane.b32.xlu0 %v910_v38, %s921_s18 }
0x1234   :  { %v500_v47 = vadd.f32 %v499_v28, %v1083_v49 }
0x1236   :  { %v916_v57 = vpop.eup %915 }
0x123b   :  { %591 = vrot.lane.b32.xlu0 %v912_v40, %s921_s18 }
0x1243   :  { %221 = vrot.lane.b32.xlu0 %v217_v43, %s920_s23 }
0x124b   :  { %503 = vrot.lane.b32.xlu0 %v500_v47, %s920_s23 }
0x129d   :  { %v752_v48 = vpop.permute.xlu0 %751 }
0x129e   :  { %v754_v50 = vmul.f32 %v752_v48, %v731_v16  ;;  %v400_v16 = vld [vmem:[%s1210_s3 + $0x4] sm:$0x3] }
0x12a0   :  { %v755_v51 = vpack.c.bf16 %v754_v50, %v754_v50 }
0x12a2   :  { %v757_v53 = vrot.slane %v755_v51, 3 }
0x12a4   :  { %758 = vrot.lane.b32.xlu1 %v757_v53, %s920_s23 }
0x12a5   :  { %v311_v54 = vpop.permute.xlu0 %310 }
0x12a6   :  { %v313_v62 = vmul.f32 %v311_v54, %v305_v58 }
0x12a8   :  { %v314_v63 = vadd.f32 %v313_v62, %v1048_v45 }
0x12ac   :  { %405 = vrot.lane.b32.xlu1 %v914_v56, %s921_s18 }
0x12ad   :  { %v592_v49 = vpop.permute.xlu0 %591 }
0x12ae   :  { %v594_v2 = vmul.f32 %v592_v49, %v586_v0 }
0x12b0   :  { %v595_v5 = vadd.f32 %v594_v2, %v1098_v23 }
0x12b4   :  { %686 = vrot.lane.b32.xlu1 %v916_v57, %s921_s18 }
0x12b5   :  { %v222_v6 = vpop.permute.xlu0 %221 }
0x12b6   :  { %225 = vst.msk [vmem:[%s1209_s4] sm:$0x3] %vm224_vm6, %v222_v6 }
0x12bc   :  { %317 = vrot.lane.b32.xlu1 %v314_v63, %s920_s23 }
0x12bd   :  { %v504_v1 = vpop.permute.xlu0 %503 }
0x12be   :  { %506 = vst.msk [vmem:[%s1209_s4 + $0x6] sm:$0x3] %vm224_vm6, %v504_v1 }
0x12c4   :  { %598 = vrot.lane.b32.xlu1 %v595_v5, %s920_s23 }
0x1316   :  { %v759_v7 = vpop.permute.xlu1 %758 }
0x1317   :  { %846 = vmatmul.msk.bf16.vlgmr.msrb.gmra.mxu2 %vm112_vm5, %v759_v7 }
0x131e   :  { %v406_v45 = vpop.permute.xlu1 %405 }
0x131f   :  { %v408_v18 = vmul.f32 %v406_v45, %v400_v16 }
0x1321   :  { %v409_v20 = vadd.f32 %v408_v18, %v1068_v19 }
0x1326   :  { %v687_v9 = vpop.permute.xlu1 %686 }
0x132e   :  { %v318_v10 = vpop.permute.xlu1 %317 }
0x132f   :  { %320 = vst.msk [vmem:[%s1209_s4 + $0x2] sm:$0x3] %vm224_vm6, %v318_v10 }
0x1336   :  { %v599_v11 = vpop.permute.xlu1 %598 }
0x1337   :  { %601 = vst.msk [vmem:[%s1209_s4 + $0x8] sm:$0x3] %vm224_vm6, %v599_v11 }
0x139a   :  { %v772_v23 = vpop.f32.mrf.mxu2 }
0x139b   :  { %v773_v12 = vadd.f32 %v1025_v3, %v772_v23  ;;  %v681_v3 = vld [vmem:[%s1210_s3 + $0xa] sm:$0x3] }
0x139c   :  { %v689_v21 = vmul.f32 %v687_v9, %v681_v3 }
0x139d   :  { %v777_v13 = vmul.f32 0.5, %v773_v12  ;;  %786 = vst.msk [vmem:[%s1209_s4 + $0xc] sm:$0x3] %vm218_vm10, %v773_v12 }
0x139e   :  { %v690_v60 = vadd.f32 %v689_v21, %v1113_v59 }
0x139f   :  { %v778_v14 = vmul.f32 1.442695, %v777_v13 }
0x13a1   :  { %917 = vpow2.f32 %v778_v14 }
0x13a2   :  { %v774_v15 = vpop.f32.mrf.mxu2 }
0x13a7   :  { %v918_v17 = vpop.eup %917 }
0x13a8   :  { %781 = vrot.lane.b32.xlu2 %v918_v17, %s921_s18 }
0x13b0   :  { %412 = vrot.lane.b32.xlu2 %v409_v20, %s920_s23 }
0x13b8   :  { %693 = vrot.lane.b32.xlu2 %v690_v60, %s920_s23 }
0x1402   :  { %v782_v22 = vpop.permute.xlu2 %781 }
0x1403   :  { %v784_v4 = vmul.f32 %v782_v22, %v776_v61 }
0x1405   :  { %v785_v24 = vadd.f32 %v784_v4, %v773_v12 }
0x1407   :  { %788 = vrot.lane.b32.xlu0 %v785_v24, %s920_s23 }
0x140a   :  { %v413_v19 = vpop.permute.xlu2 %412 }
0x140b   :  { %415 = vst.msk [vmem:[%s1209_s4 + $0x4] sm:$0x3] %vm224_vm6, %v413_v19 }
0x1412   :  { %v694_v25 = vpop.permute.xlu2 %693 }
0x1413   :  { %696 = vst.msk [vmem:[%s1209_s4 + $0xa] sm:$0x3] %vm224_vm6, %v694_v25 }
0x1479   :  { %v789_v59 = vpop.permute.xlu0 %788 }
0x147a   :  { %791 = vst.msk [vmem:[%s1209_s4 + $0xc] sm:$0x3] %vm224_vm6, %v789_v59 }

</bundles_post_ra>
